<compile_context>
chip_gen: v7x
topology: tpu7x:2x2x1
jax: 0.10.0
libtpu: 0.0.40
codegen_flags: <defaults>
</compile_context>

<pallas_src>
import math

import jax
import jax.numpy as jnp
from jax.experimental import pallas as pl
from jax.experimental.pallas import tpu as pltpu


# --------------------------------------------------------------------------- #
# Kernel
# --------------------------------------------------------------------------- #
def _add_pe_kernel(x_ref, pe_ref, o_ref):
    # x_ref:  (TM, TN) tile of the flattened activations (x dtype)
    # pe_ref: (1,  TN) resident positional-encoding slab (f32)
    # o_ref:  (TM, TN) output tile (promoted dtype)
    # (1, TN) broadcasts over TM rows on the VPU; promotion happens in-kernel.
    o_ref[...] = (x_ref[...] + pe_ref[...]).astype(o_ref.dtype)


# --------------------------------------------------------------------------- #
# PE table (identical to the PyTorch __init__, f32; odd d_model handled)
# --------------------------------------------------------------------------- #
def make_positional_encoding(d_model: int, max_len: int = 24) -> jnp.ndarray:
    position = jnp.arange(max_len, dtype=jnp.float32)[:, None]            # (max_len, 1)
    div_term = jnp.exp(
        jnp.arange(0, d_model, 2, dtype=jnp.float32)
        * (-math.log(10000.0) / d_model)
    )                                                                     # (ceil(d/2),)
    args = position * div_term                                            # (max_len, ceil(d/2))
    pe = jnp.zeros((1, max_len, d_model), dtype=jnp.float32)
    pe = pe.at[0, :, 0::2].set(jnp.sin(args))
    pe = pe.at[0, :, 1::2].set(jnp.cos(args)[:, : d_model // 2])          # works for odd d_model
    return pe


def prepare_pe_row(pe: jnp.ndarray, seq_len: int) -> jnp.ndarray:
    """Hoistable per-seq_len prep: (1, max_len, D) -> (1, seq_len*D) f32 slab.

    Call once at model init / per sequence length and pass the result to
    positional_encoding_forward to avoid a per-step slice+reshape dispatch.
    """
    _, max_len, d = pe.shape
    assert seq_len <= max_len, "sequence length exceeds max_len of the PE table"
    return pe[:, :seq_len, :].reshape(1, seq_len * d)


# --------------------------------------------------------------------------- #
# Tile selection
# --------------------------------------------------------------------------- #
def _round_up(x: int, m: int) -> int:
    return ((x + m - 1) // m) * m


def _choose_tiles(n_rows: int, row: int, x_itemsize: int, out_itemsize: int,
                  *, target_tile_bytes: int = 4 << 20,
                  min_grid_steps: int = 4,
                  min_split_bytes: int = 2 << 20) -> tuple[int, int]:
    """Pick (tm, tn) block dims for the (n_rows, row) slab.

    - tn: full row, or a multiple of 128 when the row alone exceeds the budget
      (keeps every tile ~target_tile_bytes and VMEM bounded for huge S*D).
    - tm: dtype-aware sublane multiple (8 f32 / 16 bf16 / 32 int8), capped so
      the grid has >= min_grid_steps steps once the problem is > min_split_bytes
      (so v7x's second TensorCore is never idle).
    """
    itemsize = max(x_itemsize, out_itemsize)
    sublane = max(8, 32 // x_itemsize)        # dtype-aware sublane packing
    lane = 128

    # Lane (last-dim) tile.
    if row * itemsize <= target_tile_bytes:
        tn = row
    else:
        tn = max(lane, (target_tile_bytes // (itemsize * lane)) * lane)
    lane_steps = pl.cdiv(row, tn)

    # Row (second-to-last) tile: biggest sublane multiple within the budget.
    rows_budget = max(1, target_tile_bytes // (tn * itemsize))
    tm = max(sublane, (rows_budget // sublane) * sublane)

    # Guarantee enough grid steps for dual-TC sharding on big-enough problems.
    total_bytes = n_rows * row * (x_itemsize + out_itemsize)
    if total_bytes > min_split_bytes:
        needed_row_steps = max(1, -(-min_grid_steps // lane_steps))   # ceil div
        tm = min(tm, _round_up(-(-n_rows // needed_row_steps), sublane))
        tm = max(tm, sublane)

    if tm >= n_rows:
        tm = n_rows            # full dim is always a legal block dim
    if tn >= row:
        tn = row
    return tm, tn


# --------------------------------------------------------------------------- #
# Forward
# --------------------------------------------------------------------------- #
def positional_encoding_forward(x: jnp.ndarray, pe: jnp.ndarray, *,
                                row_tile: int | None = None,
                                lane_tile: int | None = None,
                                target_tile_bytes: int = 4 << 20,
                                min_pallas_bytes: int = 256 << 10,
                                force_pallas: bool = False) -> jnp.ndarray:
    """x: (B, S, D).  pe: either the (1, max_len, D) f32 table or a pre-hoisted
    (1, S*D) slab from prepare_pe_row().  Returns x + pe[:, :S] (dropout p=0)."""
    B, S, D = x.shape
    row = S * D

    pe_row = pe if pe.ndim == 2 else prepare_pe_row(pe, S)
    assert pe_row.shape == (1, row), "pe slab does not match (1, S*D)"

    # PyTorch adds the f32 pe buffer -> bf16 x promotes to f32 output.
    out_dtype = jnp.promote_types(x.dtype, pe_row.dtype)

    # Tiny-input bypass: pallas_call fixed cost dominates sub-~256 KiB adds.
    if not force_pallas and (x.size * x.dtype.itemsize) < min_pallas_bytes:
        return x + pe_row.reshape(1, S, D)

    x2d = x.reshape(B, row)
    tm, tn = _choose_tiles(B, row, x.dtype.itemsize, jnp.dtype(out_dtype).itemsize,
                           target_tile_bytes=target_tile_bytes)
    if row_tile is not None:
        tm = row_tile
    if lane_tile is not None:
        tn = lane_tile
    grid = (pl.cdiv(B, tm), pl.cdiv(row, tn))

    # VMEM budget from the actual double-buffered footprint (2x in + 2x out +
    # 2x pe), clamped so it stays well under v7x's 64 MiB physical VMEM.
    buf_bytes = (tm * tn * (x.dtype.itemsize + jnp.dtype(out_dtype).itemsize)
                 + tn * pe_row.dtype.itemsize)
    vmem_limit = int(min(max(2 * buf_bytes + (2 << 20), 16 << 20), 48 << 20))

    out = pl.pallas_call(
        _add_pe_kernel,
        out_shape=jax.ShapeDtypeStruct((B, row), out_dtype),
        grid_spec=pltpu.PrefetchScalarGridSpec(
            num_scalar_prefetch=0,
            grid=grid,
            in_specs=[
                pl.BlockSpec((tm, tn), lambda i, j: (i, j)),   # lane-dense x tile
                pl.BlockSpec((1, tn), lambda i, j: (0, j)),    # resident pe slab
            ],
            out_specs=pl.BlockSpec((tm, tn), lambda i, j: (i, j)),
        ),
        compiler_params=pltpu.CompilerParams(
            dimension_semantics=("parallel", "parallel"),      # shard across v7x's 2 TCs
            vmem_limit_bytes=vmem_limit,
        ),
    )(x2d, pe_row)

    return out.reshape(B, S, D)


# --------------------------------------------------------------------------- #
# Demo / correctness checks
# --------------------------------------------------------------------------- #
if __name__ == "__main__":
    d_model, max_len = 32, 24
    pe = make_positional_encoding(d_model, max_len)

    # Case 1: canonical tiny shape (B=2, S=8), forced through the Pallas path.
    B1, S1 = 2, 8
    x1 = jax.random.normal(jax.random.PRNGKey(0), (B1, S1, d_model), dtype=jnp.float32)
    y1 = jax.block_until_ready(positional_encoding_forward(x1, pe, force_pallas=True))
    assert jnp.allclose(y1, x1 + pe[:, :S1, :], atol=1e-6), "mismatch (case 1)"

    # Case 2: animatediff-style rows (batch*H*W, frames, channels); auto tiling,
    # with the pe slab hoisted once (reused in case 5).
    B2, S2 = 2 * 16 * 16, 16
    pe_row16 = prepare_pe_row(pe, S2)
    x2 = jax.random.normal(jax.random.PRNGKey(1), (B2, S2, d_model), dtype=jnp.float32)
    y2 = jax.block_until_ready(positional_encoding_forward(x2, pe_row16))
    assert jnp.allclose(y2, x2 + pe[:, :S2, :], atol=1e-6), "mismatch (case 2)"

    # Case 3: forced multi-step row grid with a ragged last block (B=20, tile=8).
    B3, S3 = 20, 16
    x3 = jax.random.normal(jax.random.PRNGKey(2), (B3, S3, d_model), dtype=jnp.float32)
    y3 = jax.block_until_ready(
        positional_encoding_forward(x3, pe, row_tile=8, force_pallas=True))
    assert jnp.allclose(y3, x3 + pe[:, :S3, :], atol=1e-6), "mismatch (case 3)"

    # Case 4: tiny per-tile budget to exercise the lane-tiling (2-D grid) path.
    B4, S4 = 64, 16
    x4 = jax.random.normal(jax.random.PRNGKey(3), (B4, S4, d_model), dtype=jnp.float32)
    y4 = jax.block_until_ready(
        positional_encoding_forward(x4, pe, target_tile_bytes=1024, force_pallas=True))
    assert jnp.allclose(y4, x4 + pe[:, :S4, :], atol=1e-6), "mismatch (case 4)"

    # Case 5: > 2 MiB input so the >=4 grid-step (dual-TensorCore) split kicks in.
    B5, S5 = 2048, 16
    x5 = jax.random.normal(jax.random.PRNGKey(4), (B5, S5, d_model), dtype=jnp.float32)
    y5 = jax.block_until_ready(positional_encoding_forward(x5, pe_row16))
    assert jnp.allclose(y5, x5 + pe[:, :S5, :], atol=1e-6), "mismatch (case 5)"

    # Case 6: bf16 activations — dtype-aware sublane tile + torch-style promotion
    # (f32 pe buffer added to bf16 x yields an f32 output).
    B6, S6 = 32, 16
    x6 = jax.random.normal(jax.random.PRNGKey(5), (B6, S6, d_model)).astype(jnp.bfloat16)
    y6 = jax.block_until_ready(positional_encoding_forward(x6, pe, force_pallas=True))
    assert y6.dtype == jnp.float32, "bf16 input should promote to f32 output"
    assert jnp.allclose(y6, x6.astype(jnp.float32) + pe[:, :S6, :], atol=1e-6), "mismatch (case 6)"

    print("KERNEL_OK")
</pallas_src>

<mosaic_0001>
module attributes {stable_mosaic.version = 11 : i64} {
  func.func @_add_pe_kernel(%arg0: i32, %arg1: i32, %arg2: memref<2x256xf32, #tpu.memory_space<vmem>>, %arg3: memref<1x256xf32, #tpu.memory_space<vmem>>, %arg4: memref<2x256xf32, #tpu.memory_space<vmem>>) attributes {dimension_semantics = [#tpu.dimension_semantics<parallel>, #tpu.dimension_semantics<parallel>], iteration_bounds = array<i64: 1, 1>, scalar_prefetch = 0 : i64, scratch_operands = 0 : i64, tpu.core_type = #tpu.core_type<tc>, window_params = [{transform_indices = @transform_0, window_bounds = array<i64: 2, 256>}, {transform_indices = @transform_1, window_bounds = array<i64: 1, 256>}, {transform_indices = @transform_2, window_bounds = array<i64: 2, 256>}]} {
    %c0 = arith.constant 0 : index
    %c0_0 = arith.constant 0 : index
    %0 = vector.load %arg2[%c0, %c0_0] : memref<2x256xf32, #tpu.memory_space<vmem>>, vector<2x256xf32>
    %c0_1 = arith.constant 0 : index
    %c0_2 = arith.constant 0 : index
    %1 = vector.load %arg3[%c0_1, %c0_2] : memref<1x256xf32, #tpu.memory_space<vmem>>, vector<1x256xf32>
    %2 = vector.broadcast %1 : vector<1x256xf32> to vector<2x256xf32>
    %3 = arith.addf %0, %2 : vector<2x256xf32>
    %c0_3 = arith.constant 0 : index
    %c0_4 = arith.constant 0 : index
    %4 = vector.load %arg4[%c0_3, %c0_4] : memref<2x256xf32, #tpu.memory_space<vmem>>, vector<2x256xf32>
    tpu.vector_store %arg4[%c0_3, %c0_4], %3 {strides = array<i32>} : memref<2x256xf32, #tpu.memory_space<vmem>>, vector<2x256xf32>,
    return
  }
  func.func @transform_0(%arg0: i32, %arg1: i32) -> (i32, i32) {
    %c0_i32 = arith.constant 0 : i32
    return %arg0, %arg1 : i32, i32
  }
  func.func @transform_1(%arg0: i32, %arg1: i32) -> (i32, i32) {
    %c0_i32 = arith.constant 0 : i32
    %c0_i32_0 = arith.constant 0 : i32
    return %c0_i32, %arg1 : i32, i32
  }
  func.func @transform_2(%arg0: i32, %arg1: i32) -> (i32, i32) {
    %c0_i32 = arith.constant 0 : i32
    return %arg0, %arg1 : i32, i32
  }
}

</mosaic_0001>

<bundles_post_ra>
// kernel: tpu_custom_call.1
= control target key start
LH: loop header
LB: loop body
LE: loop exit
PB: predicated region body
PF: predicated region fallthrough
CT: control target
= control target key end

     0   :  { %7 = vsyncpa [#allocation3], 0  ;;  %s157_s0 = inlined_call_operand.hbm [shape: f32[2,256], index: 0, kind: input, shape index: {}]   ;;  %s158_s1 = inlined_call_operand.vmem [shape: f32[1,256], index: 1, kind: input, shape index: {}]   ;;  %s159_s2 = inlined_call_operand.hbm [shape: f32[2,256], index: 2, kind: output, shape index: {}]  }
   0x1   :  { %8 = vsyncpa [#allocation4], 0  ;;  %s112_s9 = smov [#allocation2]   ;;  %s64_s13 = scalar_lea.hbm %s157_s0, 64 }
   0x2   :  { %s15_s10 = sshll.u32 %s112_s9, 4  ;;  %p65_p0 = scmp.ne.s32.totalorder %s157_s0, %s64_s13  ;;  %s16_s10 = int_to_ptr.vmem [resolvable:$true] %s15_s10 }
   0x3   :  { %p68_p1 = scmp.lt.u32.totalorder %s64_s13, %s157_s0 }
   0x5   :  { %p70_p2 = pnand %p68_p1, %p65_p0 }
   0x7   :  { %73 = shalt.err (!%p70_p2)
}
   0x8   :  { %s74_s18 = scalar_lea.vmem %s16_s10, 64  ;;  %p79_p4 = scmp.lt.s32.totalorder %s16_s10, %s16_s10 }
   0x9   :  { %p75_p3 = scmp.ne.s32.totalorder %s16_s10, %s74_s18  ;;  %p80_p5 = scmp.lt.s32.totalorder %s74_s18, %s74_s18 }
   0xb   :  { %p81_p6 = por %p80_p5, %p79_p4 }
   0xd   :  { %p82_p7 = pnand %p81_p6, %p75_p3 }
   0xf   :  { %85 = shalt.err (!%p82_p7)
}
  0x10   :  { %18 = dma.hbm_to_vmem [thread:$0]  %s157_s0, 64, %s16_s10, [#allocation3]  }
  0x11   :  { %108 = dma.done.wait [#allocation3], 64  }
  0x12   :  { %109 = vsyncadd [#allocation3], 4294967232  ;;  %v27_v0 = vlaneseq  ;;  %v113_v1 = vmov 1983009808   ;;  %v25_v7 = vld [vmem:[%s158_s1] sm:$0x3] }
  0x13   :  { %v37_v2 = vunpack.c.l.s4 %v113_v1  ;;  %v24_v12 = vld [vmem:[#allocation2] sm:$0xf]  ;;  %s114_s23 = smov [#allocation5]  }
  0x14   :  { %v28_v3 = vshrl.u32 %v27_v0, 7  ;;  %s52_s0 = sshll.u32 %s114_s23, 4  ;;  %s53_s0 = int_to_ptr.vmem [resolvable:$true] %s52_s0 }
  0x15   :  { %v38_v6 = vunpack.c.0.s8 %v37_v2  ;;  %s86_s24 = scalar_lea.vmem %s53_s0, 64  ;;  %p91_p9 = scmp.lt.s32.totalorder %s53_s0, %s53_s0 }
  0x16   :  { %v29_v4 = vsub.s32 0, %v28_v3  ;;  %v33_v5 = vsub.s32 1, %v28_v3  ;;  %p87_p8 = scmp.ne.s32.totalorder %s53_s0, %s86_s24  ;;  %p92_p10 = scmp.lt.s32.totalorder %s86_s24, %s86_s24 }
  0x17   :  { %v41_v10 = vsub.s32 %v38_v6, %v28_v3 }
  0x18   :  { %v30_v8 = vrot.slane %v25_v7, %v29_v4  ;;  %v34_v9 = vrot.slane %v25_v7, %v33_v5  ;;  %p93_p11 = por %p92_p10, %p91_p9 }
  0x1a   :  { %v35_v11 = vcombine.low %v30_v8, %v34_v9  ;;  %p94_p12 = pnand %p93_p11, %p87_p8 }
  0x1c   :  { %v42_v13 = vrot.slane %v35_v11, %v41_v10 }
  0x1e   :  { %v44_v14 = vadd.f32 %v42_v13, %v24_v12 }
  0x20   :  { %45 = vst [vmem:[#allocation5] sm:$0xf] %v44_v14 }
  0x21   :  { %97 = shalt.err (!%p94_p12)
}
  0x22   :  { %s98_s26 = scalar_lea.hbm %s159_s2, 64 }
  0x23   :  { %p99_p13 = scmp.ne.s32.totalorder %s159_s2, %s98_s26  ;;  %p102_p0 = scmp.lt.u32.totalorder %s98_s26, %s159_s2 }
  0x25   :  { %p104_p1 = pnand %p102_p0, %p99_p13 }
  0x27   :  { %107 = shalt.err (!%p104_p1)
}
  0x28   :  { %55 = dma.vmem_to_hbm [thread:$0]  %s53_s0, 64, %s159_s2, [#allocation4]  }
  0x29   :  { %110 = dma.done.wait [#allocation4], 64  }
  0x2a   :  { %111 = vsyncadd [#allocation4], 4294967232 }
  0x2b   :  { %59 = vsyncpa [#allocation3], 1 }
  0x2c   :  { %60 = vsyncpa [#allocation4], 1 }

</bundles_post_ra>
